<compile_context>
chip_gen: v6e
topology: v6e:2x2x1
jax: 0.10.0
libtpu: 0.0.40
codegen_flags: <defaults>
</compile_context>

<pallas_src>
import math

import jax
import jax.numpy as jnp
from jax.experimental import pallas as pl
from jax.experimental.pallas import tpu as pltpu

_LANES = 128


def _fa_spread_flow_kernel(consts_ref, x_ref, s_ref, t_ref, covinv_ref,
                           zs_ref, logprob_ref, logdet_ref):
    """One grid step: a (TR, 128) lane-packed tile of the batch.

    Packed layout: each 128-lane row carries P = 128 // d_pad samples, each
    occupying a contiguous d_pad-lane segment (features zero-padded D -> d_pad).

    consts_ref : SMEM (2,)          [s_std, logdet(spread_cov) + D*log(2*pi)]
    x_ref      : VMEM (TR, 128)     packed input tile
    s_ref      : VMEM (K, 128)      per-flow log-scales, lane-tiled P times
    t_ref      : VMEM (K, 128)      per-flow shifts, lane-tiled P times
    covinv_ref : VMEM (128, 128)    block-diag of P copies of padded Sigma^-1
    zs_ref     : VMEM (K, TR, 128)  out: packed flow outputs (zs[0]==x omitted)
    logprob_ref: VMEM (TR, P)       out: prior log-prob, one lane per sample
    logdet_ref : VMEM (TR, P)       out: flow log-det (batch independent)
    """
    rows, lanes = x_ref.shape
    K = s_ref.shape[0]
    P = logprob_ref.shape[1]
    d_pad = lanes // P

    s_std = consts_ref[0]
    mvn_const = consts_ref[1]

    s_all = s_ref[...]                       # (K, 128)
    t_all = t_ref[...]                       # (K, 128)
    exp_s = jnp.exp(s_all)                   # hoisted: one EUP pass

    # Sequential affine-constant flow stack (K is small & static -> unrolled).
    z = x_ref[...]
    for k in range(K):
        z = z * exp_s[k:k + 1, :] + t_all[k:k + 1, :]   # elementwise (VPU)
        zs_ref[k] = z                                   # lane-dense store

    # Flow log-det is batch independent: sum of the true (K, D) log-scales.
    # s_ref is lane-tiled P times (padding lanes are zero), so divide the
    # tiled sum by P (exact: P is a power of two).
    total_s = jnp.sum(jnp.sum(s_all, axis=1, keepdims=True),
                      axis=0, keepdims=True) * (1.0 / P)          # (1, 1)
    logdet_ref[...] = jnp.broadcast_to(total_s, (rows, P))

    # Spread shift + MVN quadratic form, fully in the packed layout.
    # Padded feature lanes have zero rows/cols in covinv, so they contribute 0.
    z_spread = z + s_std                                          # (TR, 128)
    y = jnp.dot(z_spread, covinv_ref[...],
                preferred_element_type=jnp.float32)               # MXU
    prod = y * z_spread                                           # (TR, 128)
    # Per-sample segment sums: exact f32 adds (P, d_pad are small statics).
    cols = []
    for p in range(P):
        seg = prod[:, p * d_pad:(p + 1) * d_pad]
        cols.append(jnp.sum(seg, axis=1, keepdims=True))          # (TR, 1)
    quad = jnp.concatenate(cols, axis=1)                          # (TR, P)
    logprob_ref[...] = -0.5 * quad - 0.5 * mvn_const


def fa_spread_flow_forward(x, flow_scales, flow_shifts, A_init, s_std):
    """Equivalent of FASpreadNormalizingFlowModel.forward(x, s_std).

    Returns (zs, prior_logprob, log_det) with
      zs            : (K+1, B, D)  all intermediate flow outputs (zs[0] == x)
      prior_logprob : (B,)
      log_det       : (B,)
    """
    x = x.astype(jnp.float32)
    flow_scales = flow_scales.astype(jnp.float32)
    flow_shifts = flow_shifts.astype(jnp.float32)
    B, D = x.shape
    K = flow_scales.shape[0]
    if D > _LANES:
        # TODO(synk): feature dims > 128 need a feature-tiled (unpacked) layout.
        raise NotImplementedError("feature dim > 128 not supported")

    # ---- parameter-only setup (plain JAX glue) ----------------------------
    # TODO(synk): no Pallas linear-algebra primitive; tiny DxD inverse/slogdet
    # kept in plain JAX.
    A = jnp.tril(A_init.astype(jnp.float32))
    spread_cov = A @ A.T + jnp.eye(D, dtype=jnp.float32) * (s_std ** 2)
    cov_inv = jnp.linalg.inv(spread_cov)
    _, logdet_cov = jnp.linalg.slogdet(spread_cov)
    mvn_const = logdet_cov + jnp.float32(D * math.log(2.0 * math.pi))
    consts = jnp.stack([jnp.float32(s_std), mvn_const]).astype(jnp.float32)

    # ---- lane-packed layout ------------------------------------------------
    d_pad = min(_LANES, pl.next_power_of_2(D))      # features per lane segment
    P = _LANES // d_pad                             # samples per packed row

    rows = pl.cdiv(B, P)
    # Batch tile sized so x + K zs tiles, double-buffered, stay ~12 MiB:
    # safe on every generation, including v7x's 64 MiB physical VMEM.
    bytes_per_row = (K + 1) * _LANES * 4 * 2        # x + K zs, double buffered
    max_rows = max(8, ((12 * 1024 * 1024) // bytes_per_row) // 8 * 8)
    n_tiles = pl.cdiv(rows, max_rows)
    tr = pl.cdiv(pl.cdiv(rows, n_tiles), 8) * 8     # packed rows per grid step
    rows_pad = n_tiles * tr
    b_pad = rows_pad * P

    x_pad = jnp.zeros((b_pad, d_pad), jnp.float32).at[:B, :D].set(x)
    x_packed = x_pad.reshape(rows_pad, _LANES)

    s_pad = jnp.zeros((K, d_pad), jnp.float32).at[:, :D].set(flow_scales)
    t_pad = jnp.zeros((K, d_pad), jnp.float32).at[:, :D].set(flow_shifts)
    s_tiled = jnp.tile(s_pad, (1, P))               # (K, 128)
    t_tiled = jnp.tile(t_pad, (1, P))               # (K, 128)

    covinv_pad = jnp.zeros((d_pad, d_pad), jnp.float32).at[:D, :D].set(cov_inv)
    covinv_big = jnp.kron(jnp.eye(P, dtype=jnp.float32), covinv_pad)  # (128,128)

    out_shapes = (
        jax.ShapeDtypeStruct((K, rows_pad, _LANES), jnp.float32),   # zs (packed)
        jax.ShapeDtypeStruct((rows_pad, P), jnp.float32),           # logprob
        jax.ShapeDtypeStruct((rows_pad, P), jnp.float32),           # logdet
    )

    cost = pl.CostEstimate(
        flops=int(2 * rows_pad * _LANES * _LANES        # quadratic-form matmul
                  + 3 * rows_pad * _LANES               # spread + prod + segsum
                  + 2 * K * rows_pad * _LANES),         # flow elementwise
        transcendentals=int(n_tiles * K * _LANES),      # exp once per grid step
        bytes_accessed=int(4 * rows_pad * _LANES * (K + 1)
                           + 2 * 4 * rows_pad * P),
    )

    zs_packed, logprob_packed, logdet_packed = pl.pallas_call(
        _fa_spread_flow_kernel,
        grid=(n_tiles,),
        out_shape=out_shapes,
        in_specs=[
            pl.BlockSpec(memory_space=pltpu.MemorySpace.SMEM),        # consts
            pl.BlockSpec((tr, _LANES), lambda i: (i, 0)),             # x tile
            pl.BlockSpec((K, _LANES), lambda i: (0, 0)),              # scales
            pl.BlockSpec((K, _LANES), lambda i: (0, 0)),              # shifts
            pl.BlockSpec((_LANES, _LANES), lambda i: (0, 0)),         # cov_inv
        ],
        out_specs=(
            pl.BlockSpec((K, tr, _LANES), lambda i: (0, i, 0)),       # zs
            pl.BlockSpec((tr, P), lambda i: (i, 0)),                  # logprob
            pl.BlockSpec((tr, P), lambda i: (i, 0)),                  # logdet
        ),
        compiler_params=pltpu.CompilerParams(
            dimension_semantics=("parallel",),
            vmem_limit_bytes=32 * 1024 * 1024),
        cost_estimate=cost,
    )(consts, x_packed, s_tiled, t_tiled, covinv_big)

    # Un-pack: (K, rows_pad, 128) -> (K, B, D); prepend zs[0] == x in the
    # wrapper (the kernel never writes that redundant copy).
    zs_flow = zs_packed.reshape(K, b_pad, d_pad)[:, :B, :D]
    zs = jnp.concatenate([x[None], zs_flow], axis=0)
    prior_logprob = logprob_packed.reshape(b_pad)[:B]
    log_det = logdet_packed.reshape(b_pad)[:B]
    return zs, prior_logprob, log_det


def _reference_forward(x, flow_scales, flow_shifts, A_init, s_std):
    """Pure-JAX reference mirroring the PyTorch forward semantics."""
    B, D = x.shape
    z = x
    zs = [z]
    log_det = jnp.zeros((B,), jnp.float32)
    for k in range(flow_scales.shape[0]):
        z = z * jnp.exp(flow_scales[k]) + flow_shifts[k]
        log_det = log_det + jnp.sum(flow_scales[k])
        zs.append(z)
    A = jnp.tril(A_init)
    cov = A @ A.T + jnp.eye(D, dtype=jnp.float32) * (s_std ** 2)
    cov_inv = jnp.linalg.inv(cov)
    _, logdet_cov = jnp.linalg.slogdet(cov)
    z_spread = z + s_std
    quad = jnp.sum((z_spread @ cov_inv) * z_spread, axis=1)
    logprob = -0.5 * quad - 0.5 * (logdet_cov + D * math.log(2.0 * math.pi))
    return jnp.stack(zs), logprob, log_det


if __name__ == "__main__":
    B, D, K = 64, 16, 4          # batch, flow dim, number of flows
    s_std = 0.5

    key = jax.random.PRNGKey(0)
    kx, ks, kt = jax.random.split(key, 3)
    x = jax.random.normal(kx, (B, D), dtype=jnp.float32)
    flow_scales = 0.1 * jax.random.normal(ks, (K, D), dtype=jnp.float32)
    flow_shifts = 0.1 * jax.random.normal(kt, (K, D), dtype=jnp.float32)
    # nn.Parameter(torch.diag(torch.ones(dim))) -> identity init.
    A_init = jnp.eye(D, dtype=jnp.float32)

    zs, prior_logprob, log_det = fa_spread_flow_forward(
        x, flow_scales, flow_shifts, A_init, s_std)
    jax.block_until_ready((zs, prior_logprob, log_det))

    zs_ref, lp_ref, ld_ref = _reference_forward(
        x, flow_scales, flow_shifts, A_init, s_std)

    assert zs.shape == (K + 1, B, D)
    assert prior_logprob.shape == (B,) and log_det.shape == (B,)
    assert jnp.allclose(zs, zs_ref, atol=1e-4, rtol=1e-4)
    assert jnp.allclose(prior_logprob, lp_ref, atol=1e-3, rtol=1e-4)
    assert jnp.allclose(log_det, ld_ref, atol=1e-4, rtol=1e-4)

    print("KERNEL_OK")
</pallas_src>

<mosaic_0001>
module attributes {stable_mosaic.version = 11 : i64} {
  func.func @_fa_spread_flow_kernel(%arg0: i32, %arg1: memref<2xf32, #tpu.memory_space<smem>>, %arg2: memref<8x128xf32, #tpu.memory_space<vmem>>, %arg3: memref<4x128xf32, #tpu.memory_space<vmem>>, %arg4: memref<4x128xf32, #tpu.memory_space<vmem>>, %arg5: memref<128x128xf32, #tpu.memory_space<vmem>>, %arg6: memref<4x8x128xf32, #tpu.memory_space<vmem>>, %arg7: memref<8x8xf32, #tpu.memory_space<vmem>>, %arg8: memref<8x8xf32, #tpu.memory_space<vmem>>) attributes {dimension_semantics = [#tpu.dimension_semantics<parallel>], iteration_bounds = array<i64: 1>, scalar_prefetch = 0 : i64, scratch_operands = 0 : i64, tpu.core_type = #tpu.core_type<tc>, window_params = [{transform_indices = @transform_0, window_bounds = array<i64: 2>}, {transform_indices = @transform_1, window_bounds = array<i64: 8, 128>}, {pipeline_mode = #tpu.pipeline_mode<synchronous>, transform_indices = @transform_2, window_bounds = array<i64: 4, 128>}, {pipeline_mode = #tpu.pipeline_mode<synchronous>, transform_indices = @transform_3, window_bounds = array<i64: 4, 128>}, {pipeline_mode = #tpu.pipeline_mode<synchronous>, transform_indices = @transform_4, window_bounds = array<i64: 128, 128>}, {transform_indices = @transform_5, window_bounds = array<i64: 4, 8, 128>}, {transform_indices = @transform_6, window_bounds = array<i64: 8, 8>}, {transform_indices = @transform_7, window_bounds = array<i64: 8, 8>}]} {
    %c0 = arith.constant 0 : index
    %0 = memref.load %arg1[%c0] : memref<2xf32, #tpu.memory_space<smem>>
    %c1 = arith.constant 1 : index
    %1 = memref.load %arg1[%c1] : memref<2xf32, #tpu.memory_space<smem>>
    %c0_0 = arith.constant 0 : index
    %c0_1 = arith.constant 0 : index
    %2 = vector.load %arg3[%c0_0, %c0_1] : memref<4x128xf32, #tpu.memory_space<vmem>>, vector<4x128xf32>
    %c0_2 = arith.constant 0 : index
    %c0_3 = arith.constant 0 : index
    %3 = vector.load %arg4[%c0_2, %c0_3] : memref<4x128xf32, #tpu.memory_space<vmem>>, vector<4x128xf32>
    %4 = math.exp %2 : vector<4x128xf32>
    %c0_4 = arith.constant 0 : index
    %c0_5 = arith.constant 0 : index
    %5 = vector.load %arg2[%c0_4, %c0_5] : memref<8x128xf32, #tpu.memory_space<vmem>>, vector<8x128xf32>
    %6 = vector.extract_strided_slice %4 {offsets = [0, 0], sizes = [1, 128], strides = [1, 1]} : vector<4x128xf32> to vector<1x128xf32>
    %7 = vector.broadcast %6 : vector<1x128xf32> to vector<8x128xf32>
    %8 = arith.mulf %5, %7 : vector<8x128xf32>
    %9 = vector.extract_strided_slice %3 {offsets = [0, 0], sizes = [1, 128], strides = [1, 1]} : vector<4x128xf32> to vector<1x128xf32>
    %10 = vector.broadcast %9 : vector<1x128xf32> to vector<8x128xf32>
    %11 = arith.addf %8, %10 : vector<8x128xf32>
    %c0_6 = arith.constant 0 : index
    %c0_7 = arith.constant 0 : index
    %c0_8 = arith.constant 0 : index
    %12 = vector.load %arg6[%c0_6, %c0_7, %c0_8] : memref<4x8x128xf32, #tpu.memory_space<vmem>>, vector<1x8x128xf32>
    %13 = vector.shape_cast %12 : vector<1x8x128xf32> to vector<8x128xf32>
    %14 = vector.shape_cast %11 : vector<8x128xf32> to vector<1x8x128xf32>
    tpu.vector_store %arg6[%c0_6, %c0_7, %c0_8], %14 {strides = array<i32>} : memref<4x8x128xf32, #tpu.memory_space<vmem>>, vector<1x8x128xf32>,
    %15 = vector.extract_strided_slice %4 {offsets = [1, 0], sizes = [1, 128], strides = [1, 1]} : vector<4x128xf32> to vector<1x128xf32>
    %16 = vector.broadcast %15 : vector<1x128xf32> to vector<8x128xf32>
    %17 = arith.mulf %11, %16 : vector<8x128xf32>
    %18 = vector.extract_strided_slice %3 {offsets = [1, 0], sizes = [1, 128], strides = [1, 1]} : vector<4x128xf32> to vector<1x128xf32>
    %19 = vector.broadcast %18 : vector<1x128xf32> to vector<8x128xf32>
    %20 = arith.addf %17, %19 : vector<8x128xf32>
    %c1_9 = arith.constant 1 : index
    %c0_10 = arith.constant 0 : index
    %c0_11 = arith.constant 0 : index
    %21 = vector.load %arg6[%c1_9, %c0_10, %c0_11] : memref<4x8x128xf32, #tpu.memory_space<vmem>>, vector<1x8x128xf32>
    %22 = vector.shape_cast %21 : vector<1x8x128xf32> to vector<8x128xf32>
    %23 = vector.shape_cast %20 : vector<8x128xf32> to vector<1x8x128xf32>
    tpu.vector_store %arg6[%c1_9, %c0_10, %c0_11], %23 {strides = array<i32>} : memref<4x8x128xf32, #tpu.memory_space<vmem>>, vector<1x8x128xf32>,
    %24 = vector.extract_strided_slice %4 {offsets = [2, 0], sizes = [1, 128], strides = [1, 1]} : vector<4x128xf32> to vector<1x128xf32>
    %25 = vector.broadcast %24 : vector<1x128xf32> to vector<8x128xf32>
    %26 = arith.mulf %20, %25 : vector<8x128xf32>
    %27 = vector.extract_strided_slice %3 {offsets = [2, 0], sizes = [1, 128], strides = [1, 1]} : vector<4x128xf32> to vector<1x128xf32>
    %28 = vector.broadcast %27 : vector<1x128xf32> to vector<8x128xf32>
    %29 = arith.addf %26, %28 : vector<8x128xf32>
    %c2 = arith.constant 2 : index
    %c0_12 = arith.constant 0 : index
    %c0_13 = arith.constant 0 : index
    %30 = vector.load %arg6[%c2, %c0_12, %c0_13] : memref<4x8x128xf32, #tpu.memory_space<vmem>>, vector<1x8x128xf32>
    %31 = vector.shape_cast %30 : vector<1x8x128xf32> to vector<8x128xf32>
    %32 = vector.shape_cast %29 : vector<8x128xf32> to vector<1x8x128xf32>
    tpu.vector_store %arg6[%c2, %c0_12, %c0_13], %32 {strides = array<i32>} : memref<4x8x128xf32, #tpu.memory_space<vmem>>, vector<1x8x128xf32>,
    %33 = vector.extract_strided_slice %4 {offsets = [3, 0], sizes = [1, 128], strides = [1, 1]} : vector<4x128xf32> to vector<1x128xf32>
    %34 = vector.broadcast %33 : vector<1x128xf32> to vector<8x128xf32>
    %35 = arith.mulf %29, %34 : vector<8x128xf32>
    %36 = vector.extract_strided_slice %3 {offsets = [3, 0], sizes = [1, 128], strides = [1, 1]} : vector<4x128xf32> to vector<1x128xf32>
    %37 = vector.broadcast %36 : vector<1x128xf32> to vector<8x128xf32>
    %38 = arith.addf %35, %37 : vector<8x128xf32>
    %c3 = arith.constant 3 : index
    %c0_14 = arith.constant 0 : index
    %c0_15 = arith.constant 0 : index
    %39 = vector.load %arg6[%c3, %c0_14, %c0_15] : memref<4x8x128xf32, #tpu.memory_space<vmem>>, vector<1x8x128xf32>
    %40 = vector.shape_cast %39 : vector<1x8x128xf32> to vector<8x128xf32>
    %41 = vector.shape_cast %38 : vector<8x128xf32> to vector<1x8x128xf32>
    tpu.vector_store %arg6[%c3, %c0_14, %c0_15], %41 {strides = array<i32>} : memref<4x8x128xf32, #tpu.memory_space<vmem>>, vector<1x8x128xf32>,
    %cst = arith.constant dense<0.000000e+00> : vector<4xf32>
    %42 = vector.multi_reduction <add>, %2, %cst [1] : vector<4x128xf32> to vector<4xf32>
    %43 = vector.shape_cast %42 : vector<4xf32> to vector<4x1xf32>
    %cst_16 = arith.constant dense<0.000000e+00> : vector<1xf32>
    %44 = vector.multi_reduction <add>, %43, %cst_16 [0] : vector<4x1xf32> to vector<1xf32>
    %45 = vector.shape_cast %44 : vector<1xf32> to vector<1x1xf32>
    %cst_17 = arith.constant 1.250000e-01 : f32
    %46 = vector.broadcast %cst_17 : f32 to vector<1x1xf32>
    %47 = arith.mulf %45, %46 : vector<1x1xf32>
    %48 = vector.shape_cast %47 : vector<1x1xf32> to vector<1x1xf32>
    %49 = vector.broadcast %48 : vector<1x1xf32> to vector<8x8xf32>
    %c0_18 = arith.constant 0 : index
    %c0_19 = arith.constant 0 : index
    %50 = vector.load %arg8[%c0_18, %c0_19] : memref<8x8xf32, #tpu.memory_space<vmem>>, vector<8x8xf32>
    tpu.vector_store %arg8[%c0_18, %c0_19], %49 {strides = array<i32>} : memref<8x8xf32, #tpu.memory_space<vmem>>, vector<8x8xf32>,
    %51 = vector.broadcast %0 : f32 to vector<8x128xf32>
    %52 = arith.addf %38, %51 : vector<8x128xf32>
    %c0_20 = arith.constant 0 : index
    %c0_21 = arith.constant 0 : index
    %53 = vector.load %arg5[%c0_20, %c0_21] : memref<128x128xf32, #tpu.memory_space<vmem>>, vector<128x128xf32>
    %cst_22 = arith.constant dense<0.000000e+00> : vector<8x128xf32>
    %54 = tpu.matmul %52, %53, %cst_22 {dimension_numbers = #tpu.dot_dimension_numbers<[1], [0], [0], [1], [0, 0, 1, 1], [], []>} : vector<8x128xf32>, vector<128x128xf32>, vector<8x128xf32> -> vector<8x128xf32>
    %55 = arith.mulf %54, %52 : vector<8x128xf32>
    %56 = vector.extract_strided_slice %55 {offsets = [0, 0], sizes = [8, 16], strides = [1, 1]} : vector<8x128xf32> to vector<8x16xf32>
    %cst_23 = arith.constant dense<0.000000e+00> : vector<8xf32>
    %57 = vector.multi_reduction <add>, %56, %cst_23 [1] : vector<8x16xf32> to vector<8xf32>
    %58 = vector.shape_cast %57 : vector<8xf32> to vector<8x1xf32>
    %59 = vector.extract_strided_slice %55 {offsets = [0, 16], sizes = [8, 16], strides = [1, 1]} : vector<8x128xf32> to vector<8x16xf32>
    %cst_24 = arith.constant dense<0.000000e+00> : vector<8xf32>
    %60 = vector.multi_reduction <add>, %59, %cst_24 [1] : vector<8x16xf32> to vector<8xf32>
    %61 = vector.shape_cast %60 : vector<8xf32> to vector<8x1xf32>
    %62 = vector.extract_strided_slice %55 {offsets = [0, 32], sizes = [8, 16], strides = [1, 1]} : vector<8x128xf32> to vector<8x16xf32>
    %cst_25 = arith.constant dense<0.000000e+00> : vector<8xf32>
    %63 = vector.multi_reduction <add>, %62, %cst_25 [1] : vector<8x16xf32> to vector<8xf32>
    %64 = vector.shape_cast %63 : vector<8xf32> to vector<8x1xf32>
    %65 = vector.extract_strided_slice %55 {offsets = [0, 48], sizes = [8, 16], strides = [1, 1]} : vector<8x128xf32> to vector<8x16xf32>
    %cst_26 = arith.constant dense<0.000000e+00> : vector<8xf32>
    %66 = vector.multi_reduction <add>, %65, %cst_26 [1] : vector<8x16xf32> to vector<8xf32>
    %67 = vector.shape_cast %66 : vector<8xf32> to vector<8x1xf32>
    %68 = vector.extract_strided_slice %55 {offsets = [0, 64], sizes = [8, 16], strides = [1, 1]} : vector<8x128xf32> to vector<8x16xf32>
    %cst_27 = arith.constant dense<0.000000e+00> : vector<8xf32>
    %69 = vector.multi_reduction <add>, %68, %cst_27 [1] : vector<8x16xf32> to vector<8xf32>
    %70 = vector.shape_cast %69 : vector<8xf32> to vector<8x1xf32>
    %71 = vector.extract_strided_slice %55 {offsets = [0, 80], sizes = [8, 16], strides = [1, 1]} : vector<8x128xf32> to vector<8x16xf32>
    %cst_28 = arith.constant dense<0.000000e+00> : vector<8xf32>
    %72 = vector.multi_reduction <add>, %71, %cst_28 [1] : vector<8x16xf32> to vector<8xf32>
    %73 = vector.shape_cast %72 : vector<8xf32> to vector<8x1xf32>
    %74 = vector.extract_strided_slice %55 {offsets = [0, 96], sizes = [8, 16], strides = [1, 1]} : vector<8x128xf32> to vector<8x16xf32>
    %cst_29 = arith.constant dense<0.000000e+00> : vector<8xf32>
    %75 = vector.multi_reduction <add>, %74, %cst_29 [1] : vector<8x16xf32> to vector<8xf32>
    %76 = vector.shape_cast %75 : vector<8xf32> to vector<8x1xf32>
    %77 = vector.extract_strided_slice %55 {offsets = [0, 112], sizes = [8, 16], strides = [1, 1]} : vector<8x128xf32> to vector<8x16xf32>
    %cst_30 = arith.constant dense<0.000000e+00> : vector<8xf32>
    %78 = vector.multi_reduction <add>, %77, %cst_30 [1] : vector<8x16xf32> to vector<8xf32>
    %79 = vector.shape_cast %78 : vector<8xf32> to vector<8x1xf32>
    %80 = tpu.concatenate %58, %61, %64, %67, %70, %73, %76, %79 in 1 : vector<8x1xf32>, vector<8x1xf32>, vector<8x1xf32>, vector<8x1xf32>, vector<8x1xf32>, vector<8x1xf32>, vector<8x1xf32>, vector<8x1xf32> -> vector<8x8xf32>
    %cst_31 = arith.constant -5.000000e-01 : f32
    %81 = vector.broadcast %cst_31 : f32 to vector<8x8xf32>
    %82 = arith.mulf %81, %80 : vector<8x8xf32>
    %cst_32 = arith.constant 5.000000e-01 : f32
    %83 = arith.mulf %cst_32, %1 : f32
    %84 = vector.broadcast %83 : f32 to vector<8x8xf32>
    %85 = arith.subf %82, %84 : vector<8x8xf32>
    %c0_33 = arith.constant 0 : index
    %c0_34 = arith.constant 0 : index
    %86 = vector.load %arg7[%c0_33, %c0_34] : memref<8x8xf32, #tpu.memory_space<vmem>>, vector<8x8xf32>
    tpu.vector_store %arg7[%c0_33, %c0_34], %85 {strides = array<i32>} : memref<8x8xf32, #tpu.memory_space<vmem>>, vector<8x8xf32>,
    return
  }
  func.func @transform_0(%arg0: i32) -> i32 {
    %c0_i32 = arith.constant 0 : i32
    %c0_i32_0 = arith.constant 0 : i32
    return %c0_i32 : i32
  }
  func.func @transform_1(%arg0: i32) -> (i32, i32) {
    %c0_i32 = arith.constant 0 : i32
    %c0_i32_0 = arith.constant 0 : i32
    return %arg0, %c0_i32 : i32, i32
  }
  func.func @transform_2(%arg0: i32) -> (i32, i32) {
    %c0_i32 = arith.constant 0 : i32
    %c0_i32_0 = arith.constant 0 : i32
    %c0_i32_1 = arith.constant 0 : i32
    return %c0_i32, %c0_i32_0 : i32, i32
  }
  func.func @transform_3(%arg0: i32) -> (i32, i32) {
    %c0_i32 = arith.constant 0 : i32
    %c0_i32_0 = arith.constant 0 : i32
    %c0_i32_1 = arith.constant 0 : i32
    return %c0_i32, %c0_i32_0 : i32, i32
  }
  func.func @transform_4(%arg0: i32) -> (i32, i32) {
    %c0_i32 = arith.constant 0 : i32
    %c0_i32_0 = arith.constant 0 : i32
    %c0_i32_1 = arith.constant 0 : i32
    return %c0_i32, %c0_i32_0 : i32, i32
  }
  func.func @transform_5(%arg0: i32) -> (i32, i32, i32) {
    %c0_i32 = arith.constant 0 : i32
    %c0_i32_0 = arith.constant 0 : i32
    %c0_i32_1 = arith.constant 0 : i32
    return %c0_i32, %arg0, %c0_i32_0 : i32, i32, i32
  }
  func.func @transform_6(%arg0: i32) -> (i32, i32) {
    %c0_i32 = arith.constant 0 : i32
    %c0_i32_0 = arith.constant 0 : i32
    return %arg0, %c0_i32 : i32, i32
  }
  func.func @transform_7(%arg0: i32) -> (i32, i32) {
    %c0_i32 = arith.constant 0 : i32
    %c0_i32_0 = arith.constant 0 : i32
    return %arg0, %c0_i32 : i32, i32
  }
}

</mosaic_0001>

<bundles_post_ra>
// kernel: tpu_custom_call.1
= control target key start
LH: loop header
LB: loop body
LE: loop exit
PB: predicated region body
PF: predicated region fallthrough
CT: control target
= control target key end

     0   :  { %13 = vsyncpa [#allocation5], 0  ;;  %s670_s0 = inlined_call_operand.hbm [shape: f32[2], index: 0, kind: input, shape index: {}]   ;;  %s671_s1 = inlined_call_operand.hbm [shape: f32[8,128], index: 1, kind: input, shape index: {}]   ;;  %s672_s2 = inlined_call_operand.hbm [shape: f32[4,128], index: 2, kind: input, shape index: {}]   ;;  %s673_s3 = inlined_call_operand.vmem [shape: f32[4,128], index: 3, kind: input, shape index: {}]   ;;  %s674_s4 = inlined_call_operand.hbm [shape: f32[128,128], index: 4, kind: input, shape index: {}]   ;;  %s675_s5 = inlined_call_operand.hbm [shape: f32[4,8,128], index: 5, kind: output, shape index: {0}]   ;;  %s676_s6 = inlined_call_operand.hbm [shape: f32[8,8], index: 6, kind: output, shape index: {1}]   ;;  %s677_s7 = inlined_call_operand.hbm [shape: f32[8,8], index: 7, kind: output, shape index: {2}]  }
   0x1   :  { %14 = vsyncpa [#allocation3], 0 }
   0x2   :  { %15 = vsyncpa [#allocation8], 0 }
   0x3   :  { %16 = vsyncpa [#allocation4], 0 }
   0x4   :  { %17 = vsyncpa [#allocation12], 0  ;;  %s553_s24 = smov [#allocation7]   ;;  %s554_s26 = smov [#allocation6]  }
   0x5   :  { %s42_s25 = sshll.u32 %s553_s24, 4  ;;  %s32_s27 = sshll.u32 %s554_s26, 4  ;;  %s43_s25 = int_to_ptr.vmem [resolvable:$true] %s42_s25  ;;  %s33_s27 = int_to_ptr.vmem [resolvable:$true] %s32_s27 }
   0x6   :  { %s423_s28 = scalar_lea.vmem %s43_s25, 64  ;;  %p428_p1 = scmp.lt.s32.totalorder %s43_s25, %s43_s25 }
   0x7   :  { %p424_p0 = scmp.ne.s32.totalorder %s43_s25, %s423_s28  ;;  %p429_p2 = scmp.lt.s32.totalorder %s423_s28, %s423_s28 }
   0x9   :  { %p430_p3 = por %p429_p2, %p428_p1 }
   0xb   :  { %p431_p4 = pnand %p430_p3, %p424_p0 }
   0xd   :  { %434 = shalt.err (!%p431_p4)
}
   0xe   :  { %45 = dma.hbm_to_vmem [thread:$0]  %s672_s2, 64, %s43_s25, [#allocation8]  }
   0xf   :  { %s555_s8 = smov [#allocation2]   ;;  %s451_s11 = scalar_lea.vmem %s33_s27, 128 }
  0x10   :  { %25 = dma.hbm_to_smem %s670_s0, 16, %s555_s8, [#allocation5]  }
  0x11   :  { %p452_p5 = scmp.ne.s32.totalorder %s33_s27, %s451_s11  ;;  %p456_p6 = scmp.lt.s32.totalorder %s33_s27, %s33_s27 }
  0x12   :  { %p457_p7 = scmp.lt.s32.totalorder %s451_s11, %s451_s11 }
  0x14   :  { %p458_p8 = por %p457_p7, %p456_p6 }
  0x16   :  { %p459_p9 = pnand %p458_p8, %p452_p5 }
  0x18   :  { %462 = shalt.err (!%p459_p9)
}
  0x19   :  { %35 = dma.hbm_to_vmem [thread:$0]  %s671_s1, 128, %s33_s27, [#allocation3]  }
  0x1a   :  { %s556_s14 = smov [#allocation9]  }
  0x1b   :  { %s53_s15 = sshll.u32 %s556_s14, 4  ;;  %s54_s15 = int_to_ptr.vmem [resolvable:$true] %s53_s15 }
  0x1c   :  { %s471_s2 = scalar_lea.vmem %s54_s15, 2048  ;;  %p476_p11 = scmp.lt.s32.totalorder %s54_s15, %s54_s15 }
  0x1d   :  { %p472_p10 = scmp.ne.s32.totalorder %s54_s15, %s471_s2  ;;  %p477_p12 = scmp.lt.s32.totalorder %s471_s2, %s471_s2 }
  0x1f   :  { %p478_p13 = por %p477_p12, %p476_p11 }
  0x21   :  { %p479_p0 = pnand %p478_p13, %p472_p10 }
  0x23   :  { %482 = shalt.err (!%p479_p0)
}
  0x24   :  { %s557_s0 = smov 128   ;;  %s558_s16 = smov 8  }
  0x25   :  { %59 = dma.hbm_to_vmem [thread:$0]  %s674_s4, 2048, %s54_s15, [#allocation8], %s557_s0, %s557_s0, %s558_s16  }
  0x26   :  { %543 = dma.done.wait [#allocation5], 16  }
  0x27   :  { %544 = vsyncadd [#allocation5], 4294967280 }
  0x28   :  { %545 = dma.done.wait [#allocation3], 128  }
  0x29   :  { %546 = vsyncadd [#allocation3], 4294967168 }
  0x2a   :  { %547 = dma.done.wait [#allocation8], 2112  }
  0x2b   :  { %548 = vsyncadd [#allocation8], 4294965184 }
  0x2c   :  { %72 = sfence }
  0x2d   :  { %v158_v0 = vld [vmem:[#allocation9 + $0x78] sm:$0xff]  ;;  %v559_v1 = vmov 0.0   ;;  %v157_v2 = vld [vmem:[#allocation9 + $0x70] sm:$0xff]  ;;  %vm560_vm0 = vmmov 0   ;;  %v156_v3 = vld [vmem:[#allocation9 + $0x68] sm:$0xff]  ;;  %vm127_vm1 = vcmask 1043456   ;;  %v80_v10 = vlaneseq }
  0x2e   :  { %360 = vmatprep.subr.mxu0 %v559_v1  ;;  %392 = vmatprep.mubr.msk.f32.mxu0 %vm560_vm0, %v559_v1  ;;  %v155_v4 = vld [vmem:[#allocation9 + $0x60] sm:$0xff]  ;;  %v75_v5 = vld [vmem:[#allocation7] sm:$0xf]  ;;  %v153_v9 = vld [vmem:[#allocation9 + $0x50] sm:$0xff]  ;;  %vm139_vm2 = vcmask 64512   ;;  %s561_s19 = smov 96  }
  0x2f   :  { %361 = vmatpush3.msra.mxu0 %v158_v0  ;;  %v77_v6 = vmul.f32 1.442695, %v75_v5  ;;  %v154_v7 = vld [vmem:[#allocation9 + $0x58] sm:$0xff]  ;;  %v128_v8 = vsel %vm127_vm1, %v75_v5, 0.0  ;;  %v152_v11 = vld [vmem:[#allocation9 + $0x48] sm:$0xff]  ;;  %v151_v12 = vld [vmem:[#allocation9 + $0x40] sm:$0xff] }
  0x30   :  { %362 = vmatprep.subr.mxu0 %v559_v1  ;;  %129 = vadd.xlane.f32.xlu0 %v128_v8  ;;  %v81_v13 = vshrl.u32 %v80_v10, 7  ;;  %v150_v14 = vld [vmem:[#allocation9 + $0x38] sm:$0xff]  ;;  %v149_v15 = vld [vmem:[#allocation9 + $0x30] sm:$0xff]  ;;  %v148_v17 = vld [vmem:[#allocation9 + $0x28] sm:$0xff]  ;;  %s562_s20 = smov 112   ;;  %s563_s21 = smov 48  }
  0x31   :  { %363 = vmatpush3.msra.mxu0 %v157_v2  ;;  %413 = vpow2.f32 %v77_v6  ;;  %v76_v18 = vld [vmem:[%s673_s3] sm:$0xf]  ;;  %v147_v21 = vld [vmem:[#allocation9 + $0x20] sm:$0xff]  ;;  %v79_v22 = vld [vmem:[#allocation6] sm:$0xff]  ;;  %s73_s3 = sld [smem:[#allocation2]]  ;;  %s564_s22 = smov 80  }
  0x32   :  { %364 = vmatprep.subr.mxu0 %v559_v1  ;;  %v82_v16 = vsub.s32 0, %v81_v13  ;;  %v93_v19 = vsub.s32 1, %v81_v13  ;;  %v146_v25 = vld [vmem:[#allocation9 + $0x18] sm:$0xff]  ;;  %v105_v28 = vsub.s32 2, %v81_v13  ;;  %v145_v29 = vld [vmem:[#allocation9 + $0x10] sm:$0xff]  ;;  %v144_v32 = vld [vmem:[#allocation9 + $0x8] sm:$0xff] }
  0x33   :  { %365 = vmatpush3.msra.mxu0 %v156_v3  ;;  %v117_v35 = vsub.s32 3, %v81_v13  ;;  %v143_v36 = vld [vmem:[#allocation9] sm:$0xff]  ;;  %s565_s23 = smov 64   ;;  %s566_s24 = smov 32   ;;  %vm230_vm3 = vcmask 130048  }
  0x34   :  { %366 = vmatprep.subr.mxu0 %v559_v1  ;;  %v88_v24 = vrot.slane %v76_v18, %v82_v16  ;;  %v99_v31 = vrot.slane %v76_v18, %v93_v19  ;;  %v111_v38 = vrot.slane %v76_v18, %v105_v28  ;;  %s567_s25 = smov 16   ;;  %s568_s26 = smov [#allocation10]  }
  0x35   :  { %367 = vmatpush3.msra.mxu0 %v155_v4  ;;  %v123_v42 = vrot.slane %v76_v18, %v117_v35  ;;  %s301_s27 = sshll.u32 %s568_s26, 4  ;;  %s302_s27 = int_to_ptr.vmem [resolvable:$true] %s301_s27 }
  0x36   :  { %368 = vmatprep.subr.mxu0 %v559_v1  ;;  %s483_s28 = scalar_lea.vmem %s302_s27, 512  ;;  %p488_p2 = scmp.lt.s32.totalorder %s302_s27, %s302_s27 }
  0x37   :  { %369 = vmatpush3.msra.mxu0 %v154_v7  ;;  %v141_v44 = vstv %s73_s3  ;;  %p484_p1 = scmp.ne.s32.totalorder %s302_s27, %s483_s28  ;;  %p489_p3 = scmp.lt.s32.totalorder %s483_s28, %s483_s28 }
  0x38   :  { %370 = vmatprep.subr.mxu0 %v559_v1 }
  0x39   :  { %371 = vmatpush3.msra.mxu0 %v153_v9  ;;  %p490_p4 = por %p489_p3, %p488_p2 }
  0x3a   :  { %372 = vmatprep.subr.mxu0 %v559_v1 }
  0x3b   :  { %373 = vmatpush3.msra.mxu0 %v152_v11  ;;  %p491_p5 = pnand %p490_p4, %p484_p1 }
  0x3c   :  { %374 = vmatprep.subr.mxu0 %v559_v1 }
  0x3d   :  { %375 = vmatpush3.msra.mxu0 %v151_v12 }
  0x3e   :  { %376 = vmatprep.subr.mxu0 %v559_v1  ;;  %v414_v20 = vpop.eup %413 }
  0x3f   :  { %377 = vmatpush3.msra.mxu0 %v150_v14  ;;  %v83_v23 = vrot.slane %v414_v20, %v82_v16  ;;  %v94_v27 = vrot.slane %v414_v20, %v93_v19  ;;  %v106_v34 = vrot.slane %v414_v20, %v105_v28  ;;  %v118_v40 = vrot.slane %v414_v20, %v117_v35 }
  0x40   :  { %378 = vmatprep.subr.mxu0 %v559_v1 }
  0x41   :  { %379 = vmatpush3.msra.mxu0 %v149_v15  ;;  %v84_v26 = vmul.f32 %v83_v23, %v79_v22 }
  0x42   :  { %380 = vmatprep.subr.mxu0 %v559_v1 }
  0x43   :  { %381 = vmatpush3.msra.mxu0 %v148_v17  ;;  %v89_v30 = vadd.f32 %v88_v24, %v84_v26 }
  0x44   :  { %382 = vmatprep.subr.mxu0 %v559_v1 }
  0x45   :  { %383 = vmatpush3.msra.mxu0 %v147_v21  ;;  %v95_v33 = vmul.f32 %v94_v27, %v89_v30  ;;  %90 = vst [vmem:[#allocation10] sm:$0xff] %v89_v30 }
  0x46   :  { %384 = vmatprep.subr.mxu0 %v559_v1 }
  0x47   :  { %385 = vmatpush3.msra.mxu0 %v146_v25  ;;  %v100_v37 = vadd.f32 %v99_v31, %v95_v33 }
  0x48   :  { %386 = vmatprep.subr.mxu0 %v559_v1 }
  0x49   :  { %387 = vmatpush3.msra.mxu0 %v145_v29  ;;  %v107_v39 = vmul.f32 %v106_v34, %v100_v37  ;;  %102 = vst [vmem:[#allocation10 + $0x8] sm:$0xff] %v100_v37 }
  0x4a   :  { %388 = vmatprep.subr.mxu0 %v559_v1 }
  0x4b   :  { %389 = vmatpush3.msra.mxu0 %v144_v32  ;;  %v112_v41 = vadd.f32 %v111_v38, %v107_v39 }
  0x4c   :  { %390 = vmatprep.subr.mxu0 %v559_v1 }
  0x4d   :  { %391 = vmatpush3.msra.mxu0 %v143_v36  ;;  %v119_v43 = vmul.f32 %v118_v40, %v112_v41  ;;  %114 = vst [vmem:[#allocation10 + $0x10] sm:$0xff] %v112_v41 }
  0x4f   :  { %v124_v45 = vadd.f32 %v123_v42, %v119_v43 }
  0x51   :  { %v142_v46 = vadd.f32 %v141_v44, %v124_v45  ;;  %126 = vst [vmem:[#allocation10 + $0x18] sm:$0xff] %v124_v45 }
  0x53   :  { %393 = vmatmul.mubr.f32.vlgmr.msra.gmra.mxu0 %v142_v46 }
  0xb9   :  { %v130_v47 = vpop.xlane.xlu0 %129 }
  0xba   :  { %v131_v48 = vsel %vm127_vm1, %v130_v47, 0.0 }
  0xbb   :  { %v132_v49 = vrot.slane %v131_v48, 4 }
  0xbd   :  { %v133_v50 = vadd.f32 %v132_v49, %v131_v48 }
  0xbf   :  { %v134_v51 = vrot.slane %v133_v50, 2 }
  0xc1   :  { %v135_v52 = vadd.f32 %v134_v51, %v133_v50 }
  0xc3   :  { %v136_v53 = vrot.slane %v135_v52, 1 }
  0xc5   :  { %v137_v54 = vadd.f32 %v136_v53, %v135_v52 }
  0xc7   :  { %v138_v55 = vmul.f32 0.125, %v137_v54 }
  0xc9   :  { %140 = vst.msk [vmem:[#allocation13] sm:$0xff] %vm139_vm2, %v138_v55 }
 0x113   :  { %v225_v56 = vpop.f32.mrf.mxu0 }
 0x114   :  { %v229_v57 = vmul.f32 %v225_v56, %v142_v46 }
 0x115   :  { %v394_v58 = vpop.f32.mrf.mxu0 }
 0x116   :  { %241 = vrot.lane.b32.xlu0 %v229_v57, %s561_s19  ;;  %235 = vrot.lane.b32.xlu1 %v229_v57, %s562_s20  ;;  %v231_v59 = vsel %vm230_vm3, %v229_v57, 0.0 }
 0x11a   :  { %259 = vrot.lane.b32.xlu0 %v229_v57, %s563_s21  ;;  %247 = vrot.lane.b32.xlu1 %v229_v57, %s564_s22 }
 0x11e   :  { %253 = vrot.lane.b32.xlu1 %v229_v57, %s565_s23 }
 0x122   :  { %265 = vrot.lane.b32.xlu1 %v229_v57, %s566_s24 }
 0x126   :  { %271 = vrot.lane.b32.xlu1 %v229_v57, %s567_s25 }
 0x139   :  { %232 = vadd.xlane.f32.xlu0 %v231_v59 }
 0x188   :  { %v242_v60 = vpop.permute.xlu0 %241  ;;  %v236_v61 = vpop.permute.xlu1 %235 }
 0x189   :  { %v238_v62 = vsel %vm230_vm3, %v236_v61, 0.0  ;;  %v244_v63 = vsel %vm230_vm3, %v242_v60, 0.0 }
 0x18a   :  { %239 = vadd.xlane.f32.xlu1 %v238_v62  ;;  %245 = vadd.xlane.f32.xlu0 %v244_v63 }
 0x18c   :  { %v248_v0 = vpop.permute.xlu1 %247  ;;  %v260_v2 = vpop.permute.xlu0 %259 }
 0x18d   :  { %v250_v1 = vsel %vm230_vm3, %v248_v0, 0.0  ;;  %v262_v4 = vsel %vm230_vm3, %v260_v2, 0.0 }
 0x18e   :  { %251 = vadd.xlane.f32.xlu1 %v250_v1 }
 0x190   :  { %v254_v3 = vpop.permute.xlu1 %253 }
 0x191   :  { %v256_v5 = vsel %vm230_vm3, %v254_v3, 0.0 }
 0x192   :  { %263 = vadd.xlane.f32.xlu1 %v262_v4  ;;  %257 = vadd.xlane.f32.xlu0 %v256_v5 }
 0x194   :  { %v266_v6 = vpop.permute.xlu1 %265 }
 0x195   :  { %v268_v7 = vsel %vm230_vm3, %v266_v6, 0.0 }
 0x196   :  { %269 = vadd.xlane.f32.xlu1 %v268_v7 }
 0x198   :  { %v272_v8 = vpop.permute.xlu1 %271 }
 0x199   :  { %v274_v9 = vsel %vm230_vm3, %v272_v8, 0.0 }
 0x19a   :  { %275 = vadd.xlane.f32.xlu1 %v274_v9 }
 0x19b   :  { %494 = shalt.err (!%p491_p5)
}
 0x19c   :  { %307 = dma.vmem_to_hbm [thread:$0]  %s302_s27, 512, %s675_s5, [#allocation4], %s557_s0, %s557_s0, %s558_s16   ;;  %vm277_vm4 = vcmask 7168   ;;  %vm279_vm5 = vcmask 15360   ;;  %vm281_vm6 = vcmask 23552   ;;  %vm283_vm7 = vcmask 31744  }
 0x19d   :  { %s342_s8 = sld [smem:[#allocation2 + $0x1]]  ;;  %vm285_vm8 = vcmask 39936   ;;  %vm287_vm9 = vcmask 48128   ;;  %vm289_vm10 = vcmask 56320   ;;  %s569_s5 = smov [#allocation11]  }
 0x19e   :  { %s314_s10 = sshll.u32 %s569_s5, 4  ;;  %s570_s11 = smov [#allocation13]   ;;  %s315_s10 = int_to_ptr.vmem [resolvable:$true] %s314_s10 }
 0x19f   :  { %s324_s12 = sshll.u32 %s570_s11, 4  ;;  %s503_s13 = scalar_lea.vmem %s315_s10, 128  ;;  %s325_s12 = int_to_ptr.vmem [resolvable:$true] %s324_s12 }
 0x1a0   :  { %p504_p6 = scmp.ne.s32.totalorder %s315_s10, %s503_s13  ;;  %p508_p7 = scmp.lt.s32.totalorder %s315_s10, %s315_s10 }
 0x1a1   :  { %p509_p8 = scmp.lt.s32.totalorder %s503_s13, %s503_s13 }
 0x1a3   :  { %s292_s9 = smul.f32 0.5, %s342_s8  ;;  %p510_p9 = por %p509_p8, %p508_p7 }
 0x1a5   :  { %v293_v25 = vstv %s292_s9  ;;  %p511_p10 = pnand %p510_p9, %p504_p6 }
 0x1c2   :  { %v233_v11 = vpop.xlane.xlu0 %232 }
 0x213   :  { %v240_v10 = vpop.xlane.xlu1 %239  ;;  %v246_v13 = vpop.xlane.xlu0 %245 }
 0x214   :  { %v278_v14 = vsel %vm277_vm4, %v233_v11, %v240_v10 }
 0x215   :  { %v280_v17 = vsel %vm279_vm5, %v278_v14, %v246_v13 }
 0x217   :  { %v252_v12 = vpop.xlane.xlu1 %251 }
 0x218   :  { %v282_v18 = vsel %vm281_vm6, %v280_v17, %v252_v12 }
 0x21b   :  { %v264_v15 = vpop.xlane.xlu1 %263  ;;  %v258_v16 = vpop.xlane.xlu0 %257 }
 0x21c   :  { %v284_v19 = vsel %vm283_vm7, %v282_v18, %v258_v16 }
 0x21d   :  { %v286_v21 = vsel %vm285_vm8, %v284_v19, %v264_v15 }
 0x21f   :  { %v270_v20 = vpop.xlane.xlu1 %269 }
 0x220   :  { %v288_v22 = vsel %vm287_vm9, %v286_v21, %v270_v20 }
 0x223   :  { %v276_v23 = vpop.xlane.xlu1 %275 }
 0x224   :  { %v290_v24 = vsel %vm289_vm10, %v288_v22, %v276_v23 }
 0x225   :  { %v291_v26 = vmul.f32 -0.5, %v290_v24 }
 0x227   :  { %v294_v27 = vsub.f32 %v291_v26, %v293_v25 }
 0x229   :  { %295 = vst.msk [vmem:[#allocation11] sm:$0xff] %vm139_vm2, %v294_v27 }
 0x22a   :  { %514 = shalt.err (!%p511_p10)
}
 0x22b   :  { %317 = dma.vmem_to_hbm [thread:$0]  %s315_s10, 128, %s676_s6, [#allocation12]  }
 0x22c   :  { %s523_s2 = scalar_lea.vmem %s325_s12, 128  ;;  %p528_p12 = scmp.lt.s32.totalorder %s325_s12, %s325_s12 }
 0x22d   :  { %p524_p11 = scmp.ne.s32.totalorder %s325_s12, %s523_s2  ;;  %p529_p13 = scmp.lt.s32.totalorder %s523_s2, %s523_s2 }
 0x22f   :  { %p530_p0 = por %p529_p13, %p528_p12 }
 0x231   :  { %p531_p1 = pnand %p530_p0, %p524_p11 }
 0x233   :  { %534 = shalt.err (!%p531_p1)
}
 0x234   :  { %327 = dma.vmem_to_hbm [thread:$0]  %s325_s12, 128, %s677_s7, [#allocation12]  }
 0x235   :  { %549 = dma.done.wait [#allocation4], 512  }
 0x236   :  { %550 = vsyncadd [#allocation4], 4294966784 }
 0x237   :  { %551 = dma.done.wait [#allocation12], 256  }
 0x238   :  { %552 = vsyncadd [#allocation12], 4294967040 }
 0x239   :  { %337 = vsyncpa [#allocation3], 1 }
 0x23a   :  { %338 = vsyncpa [#allocation8], 1 }
 0x23b   :  { %339 = vsyncpa [#allocation4], 1 }
 0x23c   :  { %340 = vsyncpa [#allocation12], 1 }
 0x23d   :  { %341 = vsyncpa [#allocation5], 1 }

</bundles_post_ra>
